<compile_context>
chip_gen: v6e
topology: v6e:2x2x1
jax: 0.10.0
libtpu: 0.0.40
codegen_flags: <defaults>
</compile_context>

<pallas_src>
import math
import functools

import jax
import jax.numpy as jnp
from jax.experimental import pallas as pl
from jax.experimental.pallas import tpu as pltpu


INPUT_DIM = 726          # 6 * 11 * 11
HIDDEN_DIM = 128
BOTTLENECK_DIM = 32


def _round_up(n, m):
    return ((n + m - 1) // m) * m


def _cdiv(a, b):
    return -(-a // b)


def _autoencoder_kernel(x_ref, w1_ref, b1_ref, w2_ref, b2_ref,
                        w3_ref, b3_ref, w4_ref, b4_ref,
                        dec_ref, enc_ref):
    """One batch tile per grid step; weights/biases stay VMEM-resident across steps."""
    # bf16 operands into the MXU, f32 accumulation; post-matmul math stays f32.
    x = x_ref[...].astype(jnp.bfloat16)                                  # (tm, 726)

    # ----- encoder: Linear(726,128) -> ReLU -> Linear(128,32) -> sigmoid -----
    h1 = jnp.dot(x, w1_ref[...], preferred_element_type=jnp.float32) + b1_ref[...]
    h1 = jnp.maximum(h1, 0.0)
    z = jnp.dot(h1.astype(jnp.bfloat16), w2_ref[...],
                preferred_element_type=jnp.float32) + b2_ref[...]
    enc = jax.nn.sigmoid(z)                                              # encode() sigmoid

    # ----- decoder: Linear(32,128) -> ReLU -> Linear(128,726) -----
    h2 = jnp.dot(enc.astype(jnp.bfloat16), w3_ref[...],
                 preferred_element_type=jnp.float32) + b3_ref[...]
    h2 = jnp.maximum(h2, 0.0)
    dec = jnp.dot(h2.astype(jnp.bfloat16), w4_ref[...],
                  preferred_element_type=jnp.float32) + b4_ref[...]

    dec_ref[...] = dec.astype(dec_ref.dtype)
    # forward() applies sigmoid to the already-sigmoided encoding (faithful to PyTorch).
    enc_ref[...] = jax.nn.sigmoid(enc).astype(enc_ref.dtype)


def init_params(key, input_dim=INPUT_DIM, hidden=HIDDEN_DIM, bottleneck=BOTTLENECK_DIM):
    """Deterministic PyTorch-style (uniform +/- 1/sqrt(fan_in)) initialization, f32."""
    dims = [(input_dim, hidden), (hidden, bottleneck),      # encoder
            (bottleneck, hidden), (hidden, input_dim)]      # decoder
    params = []
    for (fan_in, fan_out) in dims:
        key, kw, kb = jax.random.split(key, 3)
        bound = 1.0 / math.sqrt(fan_in)
        w = jax.random.uniform(kw, (fan_in, fan_out), jnp.float32, -bound, bound)
        b = jax.random.uniform(kb, (1, fan_out), jnp.float32, -bound, bound)
        params += [w, b]
    return tuple(params)


def to_kernel_params(params):
    """Weights -> bf16 (MXU operands), biases stay f32. No shape padding needed."""
    w1, b1, w2, b2, w3, b3, w4, b4 = params
    return (w1.astype(jnp.bfloat16), b1.astype(jnp.float32),
            w2.astype(jnp.bfloat16), b2.astype(jnp.float32),
            w3.astype(jnp.bfloat16), b3.astype(jnp.float32),
            w4.astype(jnp.bfloat16), b4.astype(jnp.float32))


def _choose_tile(B, block_rows):
    """Balanced batch tile: multiple of 8, never rounds B up to a multiple of tm."""
    if B < 8:
        return B, 1                               # block == full batch dim (legal)
    # At least 2 steps once B is big enough so the "parallel" axis can use both v7x TCs.
    min_tiles = 2 if B >= 1024 else 1
    n_tiles = max(_cdiv(B, block_rows), min_tiles)
    tm = _round_up(_cdiv(B, n_tiles), 8)
    tm = min(tm, (B // 8) * 8)                    # block never larger than the array rows
    return tm, _cdiv(B, tm)


@functools.partial(jax.jit, static_argnames=("block_rows",))
def basic_autoencoder_forward(x, kernel_params, block_rows=512):
    """x: (B, C, H, W) or (B, 726).  Returns (decoded (B,726), sigmoid(encoded) (B,32))."""
    B = x.shape[0]
    x2d = x.reshape(B, -1)
    assert x2d.shape[1] == INPUT_DIM

    w1, b1, w2, b2, w3, b3, w4, b4 = kernel_params

    tm, n_steps = _choose_tile(B, block_rows)
    grid = (n_steps,)

    def resident(arr):
        # Constant index_map -> parameter block stays VMEM-resident across grid steps.
        return pl.BlockSpec(arr.shape, lambda i: (0, 0))

    in_specs = [
        pl.BlockSpec((tm, INPUT_DIM), lambda i: (i, 0)),       # x tile, streamed
        resident(w1), resident(b1),
        resident(w2), resident(b2),
        resident(w3), resident(b3),
        resident(w4), resident(b4),
    ]
    out_specs = (
        pl.BlockSpec((tm, INPUT_DIM), lambda i: (i, 0)),       # dec tile (726 = full dim)
        pl.BlockSpec((tm, BOTTLENECK_DIM), lambda i: (i, 0)),  # enc tile (32 = full dim)
    )

    # Advisory cost estimate (helps XLA schedule neighbours around the custom call).
    mac = (INPUT_DIM * HIDDEN_DIM + HIDDEN_DIM * BOTTLENECK_DIM
           + BOTTLENECK_DIM * HIDDEN_DIM + HIDDEN_DIM * INPUT_DIM)
    weight_bytes = 2 * mac + 4 * (HIDDEN_DIM + BOTTLENECK_DIM + HIDDEN_DIM + INPUT_DIM)
    cost = pl.CostEstimate(
        flops=2 * B * mac,
        transcendentals=2 * B * BOTTLENECK_DIM,
        bytes_accessed=B * 4 * (2 * INPUT_DIM + BOTTLENECK_DIM) + weight_bytes,
    )

    # VMEM budget: double-buffered x/dec/enc tiles + resident bf16 weights + f32 intermediates.
    mib = 1 << 20
    est = (4 * tm * INPUT_DIM * 4                                   # x + dec, double-buffered
           + 2 * tm * BOTTLENECK_DIM * 4                            # enc, double-buffered
           + tm * (INPUT_DIM + 2 * HIDDEN_DIM + BOTTLENECK_DIM) * 6 # intermediates + slack
           + 2 * weight_bytes + 2 * mib)
    vmem_limit = int(min(48 * mib, max(32 * mib, est)))

    dec, enc = pl.pallas_call(
        _autoencoder_kernel,
        grid=grid,
        out_shape=(
            jax.ShapeDtypeStruct((B, INPUT_DIM), jnp.float32),
            jax.ShapeDtypeStruct((B, BOTTLENECK_DIM), jnp.float32),
        ),
        in_specs=in_specs,
        out_specs=out_specs,
        compiler_params=pltpu.CompilerParams(
            dimension_semantics=("parallel",),   # batch tiles independent -> both TCs on v7x
            vmem_limit_bytes=vmem_limit,
        ),
        cost_estimate=cost,
    )(x2d, *kernel_params)

    return dec, enc


def _reference_forward_matched(x, kernel_params):
    """Pure-JAX reference with the same bf16 weights / f32 accumulation as the kernel."""
    w1, b1, w2, b2, w3, b3, w4, b4 = kernel_params
    B = x.shape[0]
    xb = x.reshape(B, -1).astype(jnp.bfloat16)
    h1 = jnp.maximum(jnp.dot(xb, w1, preferred_element_type=jnp.float32) + b1, 0.0)
    enc = jax.nn.sigmoid(jnp.dot(h1.astype(jnp.bfloat16), w2,
                                 preferred_element_type=jnp.float32) + b2)
    h2 = jnp.maximum(jnp.dot(enc.astype(jnp.bfloat16), w3,
                             preferred_element_type=jnp.float32) + b3, 0.0)
    dec = jnp.dot(h2.astype(jnp.bfloat16), w4,
                  preferred_element_type=jnp.float32) + b4
    return dec, jax.nn.sigmoid(enc)


def _reference_forward_f32(x, params):
    """Full-f32 reference matching the PyTorch module exactly (bf16-drift check)."""
    w1, b1, w2, b2, w3, b3, w4, b4 = params
    B = x.shape[0]
    xf = x.reshape(B, -1)
    h1 = jnp.maximum(xf @ w1 + b1, 0.0)
    enc = jax.nn.sigmoid(h1 @ w2 + b2)
    h2 = jnp.maximum(enc @ w3 + b3, 0.0)
    dec = h2 @ w4 + b4
    return dec, jax.nn.sigmoid(enc)


if __name__ == "__main__":
    key = jax.random.PRNGKey(0)
    key, kx = jax.random.split(key)

    # NCHW input with C*H*W == 726 (6 * 11 * 11), batch=2
    x = jax.random.normal(kx, (2, 6, 11, 11), jnp.float32)
    params_f32 = init_params(jax.random.PRNGKey(0))
    kparams = to_kernel_params(params_f32)

    dec, enc_sig = basic_autoencoder_forward(x, kparams)
    dec = jax.block_until_ready(dec)
    enc_sig = jax.block_until_ready(enc_sig)

    assert dec.shape == (2, INPUT_DIM) and enc_sig.shape == (2, BOTTLENECK_DIM)

    # Matched-precision reference (same bf16 weights, f32 accumulation).
    ref_dec, ref_enc = _reference_forward_matched(x, kparams)
    assert jnp.allclose(dec, ref_dec, atol=2e-3, rtol=2e-3)
    assert jnp.allclose(enc_sig, ref_enc, atol=2e-3, rtol=2e-3)

    # Drift vs. a true f32 PyTorch-style forward (bf16 weight quantization only).
    f32_dec, f32_enc = _reference_forward_f32(x, params_f32)
    assert jnp.allclose(dec, f32_dec, atol=5e-2, rtol=5e-2)
    assert jnp.allclose(enc_sig, f32_enc, atol=5e-2, rtol=5e-2)

    print("KERNEL_OK")
</pallas_src>

<mosaic_0001>
module attributes {stable_mosaic.version = 11 : i64} {
  func.func @_autoencoder_kernel(%arg0: i32, %arg1: memref<2x726xf32, #tpu.memory_space<vmem>>, %arg2: memref<726x128xbf16, #tpu.memory_space<vmem>>, %arg3: memref<1x128xf32, #tpu.memory_space<vmem>>, %arg4: memref<128x32xbf16, #tpu.memory_space<vmem>>, %arg5: memref<1x32xf32, #tpu.memory_space<vmem>>, %arg6: memref<32x128xbf16, #tpu.memory_space<vmem>>, %arg7: memref<1x128xf32, #tpu.memory_space<vmem>>, %arg8: memref<128x726xbf16, #tpu.memory_space<vmem>>, %arg9: memref<1x726xf32, #tpu.memory_space<vmem>>, %arg10: memref<2x726xf32, #tpu.memory_space<vmem>>, %arg11: memref<2x32xf32, #tpu.memory_space<vmem>>) attributes {dimension_semantics = [#tpu.dimension_semantics<parallel>], iteration_bounds = array<i64: 1>, scalar_prefetch = 0 : i64, scratch_operands = 0 : i64, tpu.core_type = #tpu.core_type<tc>, window_params = [{transform_indices = @transform_0, window_bounds = array<i64: 2, 726>}, {pipeline_mode = #tpu.pipeline_mode<synchronous>, transform_indices = @transform_1, window_bounds = array<i64: 726, 128>}, {pipeline_mode = #tpu.pipeline_mode<synchronous>, transform_indices = @transform_2, window_bounds = array<i64: 1, 128>}, {pipeline_mode = #tpu.pipeline_mode<synchronous>, transform_indices = @transform_3, window_bounds = array<i64: 128, 32>}, {pipeline_mode = #tpu.pipeline_mode<synchronous>, transform_indices = @transform_4, window_bounds = array<i64: 1, 32>}, {pipeline_mode = #tpu.pipeline_mode<synchronous>, transform_indices = @transform_5, window_bounds = array<i64: 32, 128>}, {pipeline_mode = #tpu.pipeline_mode<synchronous>, transform_indices = @transform_6, window_bounds = array<i64: 1, 128>}, {pipeline_mode = #tpu.pipeline_mode<synchronous>, transform_indices = @transform_7, window_bounds = array<i64: 128, 726>}, {pipeline_mode = #tpu.pipeline_mode<synchronous>, transform_indices = @transform_8, window_bounds = array<i64: 1, 726>}, {transform_indices = @transform_9, window_bounds = array<i64: 2, 726>}, {transform_indices = @transform_10, window_bounds = array<i64: 2, 32>}]} {
    %c0 = arith.constant 0 : index
    %c0_0 = arith.constant 0 : index
    %0 = vector.load %arg1[%c0, %c0_0] : memref<2x726xf32, #tpu.memory_space<vmem>>, vector<2x726xf32>
    %1 = arith.truncf %0 : vector<2x726xf32> to vector<2x726xbf16>
    %c0_1 = arith.constant 0 : index
    %c0_2 = arith.constant 0 : index
    %2 = vector.load %arg2[%c0_1, %c0_2] : memref<726x128xbf16, #tpu.memory_space<vmem>>, vector<726x128xbf16>
    %cst = arith.constant dense<0.000000e+00> : vector<2x128xf32>
    %3 = tpu.matmul %1, %2, %cst {dimension_numbers = #tpu.dot_dimension_numbers<[1], [0], [0], [1], [0, 0, 1, 1], [], []>} : vector<2x726xbf16>, vector<726x128xbf16>, vector<2x128xf32> -> vector<2x128xf32>
    %c0_3 = arith.constant 0 : index
    %c0_4 = arith.constant 0 : index
    %4 = vector.load %arg3[%c0_3, %c0_4] : memref<1x128xf32, #tpu.memory_space<vmem>>, vector<1x128xf32>
    %5 = vector.broadcast %4 : vector<1x128xf32> to vector<2x128xf32>
    %6 = arith.addf %3, %5 : vector<2x128xf32>
    %cst_5 = arith.constant 0.000000e+00 : f32
    %7 = vector.broadcast %cst_5 : f32 to vector<2x128xf32>
    %8 = arith.maximumf %6, %7 : vector<2x128xf32>
    %9 = arith.truncf %8 : vector<2x128xf32> to vector<2x128xbf16>
    %c0_6 = arith.constant 0 : index
    %c0_7 = arith.constant 0 : index
    %10 = vector.load %arg4[%c0_6, %c0_7] : memref<128x32xbf16, #tpu.memory_space<vmem>>, vector<128x32xbf16>
    %cst_8 = arith.constant dense<0.000000e+00> : vector<2x32xf32>
    %11 = tpu.matmul %9, %10, %cst_8 {dimension_numbers = #tpu.dot_dimension_numbers<[1], [0], [0], [1], [0, 0, 1, 1], [], []>} : vector<2x128xbf16>, vector<128x32xbf16>, vector<2x32xf32> -> vector<2x32xf32>
    %c0_9 = arith.constant 0 : index
    %c0_10 = arith.constant 0 : index
    %12 = vector.load %arg5[%c0_9, %c0_10] : memref<1x32xf32, #tpu.memory_space<vmem>>, vector<1x32xf32>
    %13 = vector.broadcast %12 : vector<1x32xf32> to vector<2x32xf32>
    %14 = arith.addf %11, %13 : vector<2x32xf32>
    %15 = arith.negf %14 : vector<2x32xf32>
    %16 = math.exp %15 : vector<2x32xf32>
    %cst_11 = arith.constant 1.000000e+00 : f32
    %17 = vector.broadcast %cst_11 : f32 to vector<2x32xf32>
    %18 = arith.addf %17, %16 : vector<2x32xf32>
    %19 = arith.divf %17, %18 : vector<2x32xf32>
    %20 = arith.truncf %19 : vector<2x32xf32> to vector<2x32xbf16>
    %c0_12 = arith.constant 0 : index
    %c0_13 = arith.constant 0 : index
    %21 = vector.load %arg6[%c0_12, %c0_13] : memref<32x128xbf16, #tpu.memory_space<vmem>>, vector<32x128xbf16>
    %cst_14 = arith.constant dense<0.000000e+00> : vector<2x128xf32>
    %22 = tpu.matmul %20, %21, %cst_14 {dimension_numbers = #tpu.dot_dimension_numbers<[1], [0], [0], [1], [0, 0, 1, 1], [], []>} : vector<2x32xbf16>, vector<32x128xbf16>, vector<2x128xf32> -> vector<2x128xf32>
    %c0_15 = arith.constant 0 : index
    %c0_16 = arith.constant 0 : index
    %23 = vector.load %arg7[%c0_15, %c0_16] : memref<1x128xf32, #tpu.memory_space<vmem>>, vector<1x128xf32>
    %24 = vector.broadcast %23 : vector<1x128xf32> to vector<2x128xf32>
    %25 = arith.addf %22, %24 : vector<2x128xf32>
    %cst_17 = arith.constant 0.000000e+00 : f32
    %26 = vector.broadcast %cst_17 : f32 to vector<2x128xf32>
    %27 = arith.maximumf %25, %26 : vector<2x128xf32>
    %28 = arith.truncf %27 : vector<2x128xf32> to vector<2x128xbf16>
    %c0_18 = arith.constant 0 : index
    %c0_19 = arith.constant 0 : index
    %29 = vector.load %arg8[%c0_18, %c0_19] : memref<128x726xbf16, #tpu.memory_space<vmem>>, vector<128x726xbf16>
    %cst_20 = arith.constant dense<0.000000e+00> : vector<2x726xf32>
    %30 = tpu.matmul %28, %29, %cst_20 {dimension_numbers = #tpu.dot_dimension_numbers<[1], [0], [0], [1], [0, 0, 1, 1], [], []>} : vector<2x128xbf16>, vector<128x726xbf16>, vector<2x726xf32> -> vector<2x726xf32>
    %c0_21 = arith.constant 0 : index
    %c0_22 = arith.constant 0 : index
    %31 = vector.load %arg9[%c0_21, %c0_22] : memref<1x726xf32, #tpu.memory_space<vmem>>, vector<1x726xf32>
    %32 = vector.broadcast %31 : vector<1x726xf32> to vector<2x726xf32>
    %33 = arith.addf %30, %32 : vector<2x726xf32>
    %c0_23 = arith.constant 0 : index
    %c0_24 = arith.constant 0 : index
    %34 = vector.load %arg10[%c0_23, %c0_24] : memref<2x726xf32, #tpu.memory_space<vmem>>, vector<2x726xf32>
    tpu.vector_store %arg10[%c0_23, %c0_24], %33 {strides = array<i32>} : memref<2x726xf32, #tpu.memory_space<vmem>>, vector<2x726xf32>,
    %35 = arith.negf %19 : vector<2x32xf32>
    %36 = math.exp %35 : vector<2x32xf32>
    %cst_25 = arith.constant 1.000000e+00 : f32
    %37 = vector.broadcast %cst_25 : f32 to vector<2x32xf32>
    %38 = arith.addf %37, %36 : vector<2x32xf32>
    %39 = arith.divf %37, %38 : vector<2x32xf32>
    %c0_26 = arith.constant 0 : index
    %c0_27 = arith.constant 0 : index
    %40 = vector.load %arg11[%c0_26, %c0_27] : memref<2x32xf32, #tpu.memory_space<vmem>>, vector<2x32xf32>
    tpu.vector_store %arg11[%c0_26, %c0_27], %39 {strides = array<i32>} : memref<2x32xf32, #tpu.memory_space<vmem>>, vector<2x32xf32>,
    return
  }
  func.func @transform_0(%arg0: i32) -> (i32, i32) {
    %c0_i32 = arith.constant 0 : i32
    %c0_i32_0 = arith.constant 0 : i32
    return %arg0, %c0_i32 : i32, i32
  }
  func.func @transform_1(%arg0: i32) -> (i32, i32) {
    %c0_i32 = arith.constant 0 : i32
    %c0_i32_0 = arith.constant 0 : i32
    %c0_i32_1 = arith.constant 0 : i32
    return %c0_i32, %c0_i32_0 : i32, i32
  }
  func.func @transform_2(%arg0: i32) -> (i32, i32) {
    %c0_i32 = arith.constant 0 : i32
    %c0_i32_0 = arith.constant 0 : i32
    %c0_i32_1 = arith.constant 0 : i32
    return %c0_i32, %c0_i32_0 : i32, i32
  }
  func.func @transform_3(%arg0: i32) -> (i32, i32) {
    %c0_i32 = arith.constant 0 : i32
    %c0_i32_0 = arith.constant 0 : i32
    %c0_i32_1 = arith.constant 0 : i32
    return %c0_i32, %c0_i32_0 : i32, i32
  }
  func.func @transform_4(%arg0: i32) -> (i32, i32) {
    %c0_i32 = arith.constant 0 : i32
    %c0_i32_0 = arith.constant 0 : i32
    %c0_i32_1 = arith.constant 0 : i32
    return %c0_i32, %c0_i32_0 : i32, i32
  }
  func.func @transform_5(%arg0: i32) -> (i32, i32) {
    %c0_i32 = arith.constant 0 : i32
    %c0_i32_0 = arith.constant 0 : i32
    %c0_i32_1 = arith.constant 0 : i32
    return %c0_i32, %c0_i32_0 : i32, i32
  }
  func.func @transform_6(%arg0: i32) -> (i32, i32) {
    %c0_i32 = arith.constant 0 : i32
    %c0_i32_0 = arith.constant 0 : i32
    %c0_i32_1 = arith.constant 0 : i32
    return %c0_i32, %c0_i32_0 : i32, i32
  }
  func.func @transform_7(%arg0: i32) -> (i32, i32) {
    %c0_i32 = arith.constant 0 : i32
    %c0_i32_0 = arith.constant 0 : i32
    %c0_i32_1 = arith.constant 0 : i32
    return %c0_i32, %c0_i32_0 : i32, i32
  }
  func.func @transform_8(%arg0: i32) -> (i32, i32) {
    %c0_i32 = arith.constant 0 : i32
    %c0_i32_0 = arith.constant 0 : i32
    %c0_i32_1 = arith.constant 0 : i32
    return %c0_i32, %c0_i32_0 : i32, i32
  }
  func.func @transform_9(%arg0: i32) -> (i32, i32) {
    %c0_i32 = arith.constant 0 : i32
    %c0_i32_0 = arith.constant 0 : i32
    return %arg0, %c0_i32 : i32, i32
  }
  func.func @transform_10(%arg0: i32) -> (i32, i32) {
    %c0_i32 = arith.constant 0 : i32
    %c0_i32_0 = arith.constant 0 : i32
    return %arg0, %c0_i32 : i32, i32
  }
}

</mosaic_0001>

<bundles_post_ra>
// kernel: basic_autoencoder_forward.1
= control target key start
LH: loop header
LB: loop body
LE: loop exit
PB: predicated region body
PF: predicated region fallthrough
CT: control target
= control target key end

     0   :  { %16 = vsyncpa [#allocation3], 0  ;;  %v45_v27 = vlaneseq  ;;  %v1666_v35 = vmov 1983009808   ;;  %v1667_v37 = vmov 0   ;;  %vm449_vm0 = vcmask 703488   ;;  %s2096_s0 = inlined_call_operand.vmem [shape: f32[2,726], index: 0, kind: input, shape index: {}]   ;;  %s2097_s1 = inlined_call_operand.vmem [shape: bf16[726,128], index: 1, kind: input, shape index: {}]   ;;  %s2098_s2 = inlined_call_operand.vmem [shape: f32[1,128], index: 2, kind: input, shape index: {}]   ;;  %s2099_s3 = inlined_call_operand.vmem [shape: bf16[128,32], index: 3, kind: input, shape index: {}]   ;;  %s2100_s4 = inlined_call_operand.vmem [shape: f32[1,32], index: 4, kind: input, shape index: {}]   ;;  %s2101_s5 = inlined_call_operand.vmem [shape: bf16[32,128], index: 5, kind: input, shape index: {}]   ;;  %s2102_s6 = inlined_call_operand.vmem [shape: f32[1,128], index: 6, kind: input, shape index: {}]   ;;  %s2103_s7 = inlined_call_operand.vmem [shape: bf16[128,726], index: 7, kind: input, shape index: {}]   ;;  %s2104_s8 = inlined_call_operand.vmem [shape: f32[1,726], index: 8, kind: input, shape index: {}]   ;;  %s2105_s9 = inlined_call_operand.hbm [shape: f32[2,726], index: 9, kind: output, shape index: {0}]   ;;  %s2106_s10 = inlined_call_operand.hbm [shape: f32[2,32], index: 10, kind: output, shape index: {1}]  }
   0x1   :  { %v1485_v0 = vld [vmem:[%s2097_s1 + $0x78] sm:$0xff]   ;;  %v1489_v4 = vld [vmem:[%s2097_s1 + $0x70] sm:$0xff]   ;;  %v1493_v8 = vld [vmem:[%s2097_s1 + $0x68] sm:$0xff]   ;;  %v43_v36 = vunpack.c.l.s4 %v1666_v35 }
   0x2   :  { %v1486_v1 = vld [vmem:[%s2097_s1 + $0x38] sm:$0xff]   ;;  %1395 = vmatprep.subr.bf16.mxu0 %v1485_v0  ;;  %v1490_v5 = vld [vmem:[%s2097_s1 + $0x30] sm:$0xff]   ;;  %v1494_v9 = vld [vmem:[%s2097_s1 + $0x28] sm:$0xff]   ;;  %v1820_v32 = vshrl.u32 %v45_v27, 7 }
   0x3   :  { %v1487_v2 = vld [vmem:[%s2097_s1 + $0xf8] sm:$0xff]   ;;  %1396 = vmatpush3.bf16.msra.mxu0 %v1486_v1  ;;  %v1491_v6 = vld [vmem:[%s2097_s1 + $0xf0] sm:$0xff]   ;;  %v1495_v10 = vld [vmem:[%s2097_s1 + $0xe8] sm:$0xff]   ;;  %v44_v38 = vunpack.c.0.s8 %v43_v36 }
   0x4   :  { %v1488_v3 = vld [vmem:[%s2097_s1 + $0xb8] sm:$0xff]   ;;  %1417 = vmatprep.subr.bf16.mxu1 %v1487_v2  ;;  %1397 = vmatprep.subr.bf16.mxu0 %v1489_v4  ;;  %v1492_v7 = vld [vmem:[%s2097_s1 + $0xb0] sm:$0xff]   ;;  %v1496_v11 = vld [vmem:[%s2097_s1 + $0xa8] sm:$0xff]  }
   0x5   :  { %1418 = vmatpush3.bf16.msra.mxu1 %v1488_v3  ;;  %v1497_v12 = vld [vmem:[%s2097_s1 + $0x60] sm:$0xff]   ;;  %v1501_v16 = vld [vmem:[%s2097_s1 + $0x58] sm:$0xff]   ;;  %v1505_v20 = vld [vmem:[%s2097_s1 + $0x50] sm:$0xff]   ;;  %v1830_v40 = vsub.s32 %v44_v38, %v1820_v32 }
   0x6   :  { %1419 = vmatprep.subr.bf16.mxu1 %v1491_v6  ;;  %v1498_v13 = vld [vmem:[%s2097_s1 + $0x20] sm:$0xff]   ;;  %v1502_v17 = vld [vmem:[%s2097_s1 + $0x18] sm:$0xff]   ;;  %v1506_v21 = vld [vmem:[%s2097_s1 + $0x10] sm:$0xff]  }
   0x7   :  { %1398 = vmatpush3.bf16.msra.mxu0 %v1490_v5  ;;  %v1499_v14 = vld [vmem:[%s2097_s1 + $0xe0] sm:$0xff]   ;;  %v1503_v18 = vld [vmem:[%s2097_s1 + $0xd8] sm:$0xff]   ;;  %v1507_v22 = vld [vmem:[%s2097_s1 + $0xd0] sm:$0xff]  }
   0x8   :  { %1399 = vmatprep.subr.bf16.mxu0 %v1493_v8  ;;  %v1500_v15 = vld [vmem:[%s2097_s1 + $0xa0] sm:$0xff]   ;;  %v1504_v19 = vld [vmem:[%s2097_s1 + $0x98] sm:$0xff]   ;;  %v1508_v23 = vld [vmem:[%s2097_s1 + $0x90] sm:$0xff]  }
   0x9   :  { %1420 = vmatpush3.bf16.msra.mxu1 %v1492_v7  ;;  %v1509_v24 = vld [vmem:[%s2097_s1 + $0x48] sm:$0xff]   ;;  %v1513_v29 = vld [vmem:[%s2097_s1 + $0x40] sm:$0xff]   ;;  %v1518_v49 = vld [vmem:[%s2097_s1 + $0x138] sm:$0xff]  }
   0xa   :  { %1421 = vmatprep.subr.bf16.mxu1 %v1495_v10  ;;  %v1510_v25 = vld [vmem:[%s2097_s1 + $0x8] sm:$0xff]   ;;  %v1514_v30 = vld [vmem:[%s2097_s1] sm:$0xff]   ;;  %v1519_v50 = vld [vmem:[%s2097_s1 + $0x130] sm:$0xff]  }
   0xb   :  { %1400 = vmatpush3.bf16.msra.mxu0 %v1494_v9  ;;  %v1511_v26 = vld [vmem:[%s2097_s1 + $0xc8] sm:$0xff]   ;;  %v1515_v31 = vld [vmem:[%s2097_s1 + $0xc0] sm:$0xff]   ;;  %v1522_v56 = vld [vmem:[%s2097_s1 + $0x118] sm:$0xff]  }
   0xc   :  { %1401 = vmatprep.subr.bf16.mxu0 %v1497_v12  ;;  %v1512_v28 = vld [vmem:[%s2097_s1 + $0x88] sm:$0xff]   ;;  %v37_v33 = vld [vmem:[%s2096_s0] sm:$0xff]  ;;  %v1523_v57 = vld [vmem:[%s2097_s1 + $0x110] sm:$0xff]  }
   0xd   :  { %1422 = vmatpush3.bf16.msra.mxu1 %v1496_v11  ;;  %v1516_v34 = vld [vmem:[%s2097_s1 + $0x80] sm:$0xff]   ;;  %v41_v39 = vcombine.high %v37_v33, %v37_v33  ;;  %v48_v41 = vrot.slane %v37_v33, %v1830_v40  ;;  %v1283_v51 = vld.sshfl [vmem:[%s2096_s0 + $0x8] sm:$0x33 pattern:$0x76325410] }
   0xe   :  { %1423 = vmatprep.subr.bf16.mxu1 %v1499_v14  ;;  %v65_v52 = vcombine.high %v1283_v51, %v1283_v51  ;;  %v1520_v53 = vld [vmem:[%s2097_s1 + $0x128] sm:$0xff]   ;;  %v1521_v55 = vld [vmem:[%s2097_s1 + $0x120] sm:$0xff]  }
   0xf   :  { %1402 = vmatpush3.bf16.msra.mxu0 %v1498_v13  ;;  %v55_v42 = vrot.slane %v41_v39, %v1830_v40  ;;  %v56_v43 = vcombine.high %v48_v41, %v48_v41  ;;  %v72_v45 = vpack.c.bf16 %v48_v41, %v48_v41  ;;  %v1524_v58 = vld [vmem:[%s2097_s1 + $0x108] sm:$0xff]  }
  0x10   :  { %1403 = vmatprep.subr.bf16.mxu0 %v1501_v16  ;;  %v77_v54 = vpack.c.bf16 %v65_v52, %v65_v52 }
  0x11   :  { %1424 = vmatpush3.bf16.msra.mxu1 %v1500_v15  ;;  %v57_v44 = vcombine.high %v55_v42, %v55_v42  ;;  %v74_v46 = vpack.c.bf16 %v55_v42, %v55_v42  ;;  %v73_v47 = vpack.c.bf16 %v56_v43, %v56_v43 }
  0x12   :  { %1425 = vmatprep.subr.bf16.mxu1 %v1503_v18 }
  0x13   :  { %1404 = vmatpush3.bf16.msra.mxu0 %v1502_v17  ;;  %v75_v48 = vpack.c.bf16 %v57_v44, %v57_v44  ;;  %489 = vmatprep.mubr.bf16.mxu0 %v73_v47 }
  0x14   :  { %1405 = vmatprep.subr.bf16.mxu0 %v1505_v20 }
  0x15   :  { %1426 = vmatpush3.bf16.msra.mxu1 %v1504_v19  ;;  %529 = vmatprep.mubr.bf16.mxu1 %v75_v48 }
  0x16   :  { %1427 = vmatprep.subr.bf16.mxu1 %v1507_v22 }
  0x17   :  { %1406 = vmatpush3.bf16.msra.mxu0 %v1506_v21 }
  0x18   :  { %1407 = vmatprep.subr.bf16.mxu0 %v1509_v24 }
  0x19   :  { %1428 = vmatpush3.bf16.msra.mxu1 %v1508_v23 }
  0x1a   :  { %1429 = vmatprep.subr.bf16.mxu1 %v1511_v26 }
  0x1b   :  { %1408 = vmatpush3.bf16.msra.mxu0 %v1510_v25 }
  0x1c   :  { %1409 = vmatprep.subr.bf16.mxu0 %v1513_v29 }
  0x1d   :  { %1430 = vmatpush3.bf16.msra.mxu1 %v1512_v28 }
  0x1e   :  { %1431 = vmatprep.subr.bf16.mxu1 %v1515_v31 }
  0x1f   :  { %1410 = vmatpush3.bf16.msra.mxu0 %v1514_v30 }
  0x20   :  { %537 = vmatprep.subr.bf16.mxu0 %v1667_v37 }
  0x21   :  { %1432 = vmatpush3.bf16.msra.mxu1 %v1516_v34 }
  0x22   :  { %490 = vmatmul.mubr.bf16.vlgmr.msra.gmra.mxu0 %v72_v45 }
  0x23   :  { %538 = vmatpush1.bf16.msra.mxu0 %v1518_v49  ;;  %1331 = vmatprep.mubr.msk.bf16.mxu0 %vm449_vm0, %v77_v54 }
  0x24   :  { %530 = vmatmul.mubr.bf16.vlgmr.msra.gmra.mxu1 %v74_v46  ;;  %539 = vmatprep.subr.bf16.mxu0 %v1667_v37 }
  0x27   :  { %540 = vmatpush1.bf16.msra.mxu0 %v1519_v50 }
  0x28   :  { %541 = vmatprep.subr.bf16.mxu0 %v1667_v37 }
  0x2b   :  { %542 = vmatpush1.bf16.msra.mxu0 %v1520_v53 }
  0x2c   :  { %543 = vmatprep.subr.bf16.mxu0 %v1667_v37 }
  0x2f   :  { %544 = vmatpush1.bf16.msra.mxu0 %v1521_v55 }
  0x30   :  { %545 = vmatprep.subr.bf16.mxu0 %v1667_v37 }
  0x33   :  { %546 = vmatpush1.bf16.msra.mxu0 %v1522_v56 }
  0x34   :  { %547 = vmatprep.subr.bf16.mxu0 %v1667_v37 }
  0x37   :  { %548 = vmatpush1.bf16.msra.mxu0 %v1523_v57 }
  0x38   :  { %549 = vmatprep.subr.bf16.mxu0 %v1667_v37 }
  0x39   :  { %17 = vsyncpa [#allocation5], 0  ;;  %v1525_v59 = vld [vmem:[%s2097_s1 + $0x100] sm:$0xff]   ;;  %v1526_v60 = vld [vmem:[%s2097_s1 + $0x168] ss:$0 sps:$4 sm:$0x77]   ;;  %v76_v3 = vpack.c.bf16 %v1283_v51, %v1283_v51 }
  0x3a   :  { %vm453_vm1 = vcmask 1042432   ;;  %v1527_v62 = vld [vmem:[%s2097_s1 + $0x160] sm:$0xff]   ;;  %v1528_v63 = vld [vmem:[%s2097_s1 + $0x158] sm:$0xff]   ;;  %v1529_v0 = vld [vmem:[%s2097_s1 + $0x150] sm:$0xff]   ;;  %v1668_v5 = vmov 0.0   ;;  %vm1669_vm2 = vmmov 0  }
  0x3b   :  { %550 = vmatpush1.bf16.msra.mxu0 %v1524_v58  ;;  %v455_v61 = vsel %vm453_vm1, %v1526_v60, 0  ;;  %v1530_v1 = vld [vmem:[%s2097_s1 + $0x148] sm:$0xff]   ;;  %v1531_v2 = vld [vmem:[%s2097_s1 + $0x140] sm:$0xff]   ;;  %v1532_v4 = vld [vmem:[%s2099_s3 + $0x38] sm:$0xff]   ;;  %1451 = vmatprep.subr.bf16.mxu1 %v1668_v5  ;;  %vm720_vm3 = vcmask 261120   ;;  %vm1253_vm4 = vcmask 254976  }
  0x3c   :  { %551 = vmatprep.subr.bf16.mxu0 %v1667_v37  ;;  %1452 = vmatpush3.bf16.msra.mxu1 %v1532_v4  ;;  %v1533_v6 = vld [vmem:[%s2099_s3 + $0x30] sm:$0xff]   ;;  %v1534_v7 = vld [vmem:[%s2099_s3 + $0x28] sm:$0xff]   ;;  %v1535_v8 = vld [vmem:[%s2099_s3 + $0x20] sm:$0xff]  }
  0x3d   :  { %1453 = vmatprep.subr.bf16.mxu1 %v1668_v5  ;;  %v1536_v9 = vld [vmem:[%s2099_s3 + $0x18] sm:$0xff]   ;;  %v1537_v10 = vld [vmem:[%s2099_s3 + $0x10] sm:$0xff]   ;;  %v1538_v11 = vld [vmem:[%s2099_s3 + $0x8] sm:$0xff]   ;;  %1467 = vmatprep.mubr.msk.bf16.mxu1 %vm1669_vm2, %v1668_v5 }
  0x3e   :  { %v1539_v12 = vld [vmem:[%s2099_s3] sm:$0xff]   ;;  %v1540_v34 = vld [vmem:[%s2101_s5 + $0x8] sm:$0xff]   ;;  %v1547_v39 = vld [vmem:[%s2103_s7 + $0x15c] ss:$24 sps:$4 sm:$0xff]   ;;  %s1670_s3 = smov [#allocation4]  }
  0x3f   :  { %552 = vmatpush1.bf16.msra.mxu0 %v1525_v59  ;;  %v1284_v22 = vld [vmem:[%s2098_s2] ss:$0 sm:$0xff]  ;;  %v1542_v36 = vld [vmem:[%s2103_s7 + $0x150] ss:$24 sps:$4 sm:$0xff]   ;;  %v1544_v38 = vld [vmem:[%s2103_s7 + $0x154] ss:$24 sps:$4 sm:$0xff]  }
  0x40   :  { %557 = vmatprep.subr.bf16.mxu0 %v1667_v37  ;;  %1454 = vmatpush3.bf16.msra.mxu1 %v1533_v6  ;;  %v1541_v35 = vld [vmem:[%s2101_s5] sm:$0xff]   ;;  %v1556_v43 = vld [vmem:[%s2103_s7 + $0xf4] ss:$24 sps:$4 sm:$0xff]   ;;  %v1554_v44 = vld [vmem:[%s2103_s7 + $0xf0] ss:$24 sps:$4 sm:$0xff]   ;;  %s1271_s24 = sshll.u32 %s1670_s3, 4  ;;  %s1272_s24 = int_to_ptr.vmem [resolvable:$true] %s1271_s24 }
  0x41   :  { %1455 = vmatprep.subr.bf16.mxu1 %v1668_v5  ;;  %v1550_v41 = vld [vmem:[%s2103_s7 + $0x124] ss:$24 sps:$4 sm:$0xff]   ;;  %v1548_v42 = vld [vmem:[%s2103_s7 + $0x120] ss:$24 sps:$4 sm:$0xff]   ;;  %v1568_v47 = vld [vmem:[%s2103_s7 + $0x94] ss:$24 sps:$4 sm:$0xff]   ;;  %p1627_p1 = scmp.lt.s32.totalorder %s1272_s24, %s1272_s24 }
  0x42   :  { %v1562_v45 = vld [vmem:[%s2103_s7 + $0xc4] ss:$24 sps:$4 sm:$0xff]   ;;  %v1560_v46 = vld [vmem:[%s2103_s7 + $0xc0] ss:$24 sps:$4 sm:$0xff]   ;;  %v1566_v48 = vld [vmem:[%s2103_s7 + $0x90] ss:$24 sps:$4 sm:$0xff]  }
  0x43   :  { %558 = vmatpush2.bf16.msra.mxu0 %v455_v61  ;;  %v1574_v49 = vld [vmem:[%s2103_s7 + $0x64] ss:$24 sps:$4 sm:$0xff]   ;;  %v1572_v50 = vld [vmem:[%s2103_s7 + $0x60] ss:$24 sps:$4 sm:$0xff]   ;;  %v1580_v51 = vld [vmem:[%s2103_s7 + $0x34] ss:$24 sps:$4 sm:$0xff]  }
  0x44   :  { %559 = vmatprep.subr.bf16.mxu0 %v1667_v37  ;;  %1456 = vmatpush3.bf16.msra.mxu1 %v1534_v7  ;;  %v1578_v52 = vld [vmem:[%s2103_s7 + $0x30] ss:$24 sps:$4 sm:$0xff]   ;;  %v1332_v53 = vld [vmem:[%s2100_s4] ss:$0 sm:$0xff]  ;;  %v1559_v4 = vld [vmem:[%s2103_s7 + $0xfc] ss:$24 sps:$4 sm:$0xff]  }
  0x45   :  { %1457 = vmatprep.subr.bf16.mxu1 %v1668_v5  ;;  %v1565_v6 = vld [vmem:[%s2103_s7 + $0xcc] ss:$24 sps:$4 sm:$0xff]   ;;  %v1563_v7 = vld [vmem:[%s2103_s7 + $0xc8] ss:$24 sps:$4 sm:$0xff]  }
  0x47   :  { %560 = vmatpush2.bf16.msra.mxu0 %v1527_v62 }
  0x48   :  { %561 = vmatprep.subr.bf16.mxu0 %v1667_v37  ;;  %1458 = vmatpush3.bf16.msra.mxu1 %v1535_v8  ;;  %v1571_v8 = vld [vmem:[%s2103_s7 + $0x9c] ss:$24 sps:$4 sm:$0xff]  }
  0x49   :  { %1459 = vmatprep.subr.bf16.mxu1 %v1668_v5 }
  0x4b   :  { %562 = vmatpush2.bf16.msra.mxu0 %v1528_v63  ;;  %v1545_v63 = vld [vmem:[%s2103_s7 + $0x158] ss:$24 sps:$4 sm:$0xff]  }
  0x4c   :  { %563 = vmatprep.subr.bf16.mxu0 %v1667_v37  ;;  %1460 = vmatpush3.bf16.msra.mxu1 %v1536_v9 }
  0x4d   :  { %1461 = vmatprep.subr.bf16.mxu1 %v1668_v5 }
  0x4f   :  { %564 = vmatpush2.bf16.msra.mxu0 %v1529_v0 }
  0x50   :  { %565 = vmatprep.subr.bf16.mxu0 %v1667_v37  ;;  %1462 = vmatpush3.bf16.msra.mxu1 %v1537_v10  ;;  %v1569_v10 = vld [vmem:[%s2103_s7 + $0x98] ss:$24 sps:$4 sm:$0xff]  }
  0x51   :  { %1463 = vmatprep.subr.bf16.mxu1 %v1668_v5 }
  0x53   :  { %566 = vmatpush2.bf16.msra.mxu0 %v1530_v1 }
  0x54   :  { %567 = vmatprep.subr.bf16.mxu0 %v1667_v37  ;;  %1464 = vmatpush3.bf16.msra.mxu1 %v1538_v11  ;;  %v1577_v11 = vld [vmem:[%s2103_s7 + $0x6c] ss:$24 sps:$4 sm:$0xff]  }
  0x55   :  { %1465 = vmatprep.subr.bf16.mxu1 %v1668_v5 }
  0x57   :  { %568 = vmatpush2.bf16.msra.mxu0 %v1531_v2  ;;  %v1553_v2 = vld [vmem:[%s2103_s7 + $0x12c] ss:$24 sps:$4 sm:$0xff]  }
  0x58   :  { %1471 = vmatprep.subr.bf16.mxu0 %v1668_v5  ;;  %1466 = vmatpush3.bf16.msra.mxu1 %v1539_v12 }
  0x59   :  { %1086 = vmatprep.subr.bf16.mxu1 %v1544_v38  ;;  %v1604_v38 = vld [vmem:[%s2103_s7 + $0xa4] ss:$24 sps:$4 sm:$0xff]  }
  0x5a   :  { %570 = vmatmul.mubr.bf16.vlgmr.msra.gmra.mxu0 %v76_v3  ;;  %v1551_v3 = vld [vmem:[%s2103_s7 + $0x128] ss:$24 sps:$4 sm:$0xff]  }
  0x5b   :  { %1475 = vmatprep.mubr.msk.bf16.mxu0 %vm1669_vm2, %v1668_v5  ;;  %1472 = vmatpush3.bf16.msra.mxu0 %v1540_v34  ;;  %v1598_v34 = vld [vmem:[%s2103_s7 + $0x104] ss:$24 sps:$4 sm:$0xff]  }
  0x5c   :  { %1473 = vmatprep.subr.bf16.mxu0 %v1668_v5  ;;  %v1557_v5 = vld [vmem:[%s2103_s7 + $0xf8] ss:$24 sps:$4 sm:$0xff]  }
  0x5f   :  { %1474 = vmatpush3.bf16.msra.mxu0 %v1541_v35  ;;  %v1596_v35 = vld [vmem:[%s2103_s7 + $0x100] ss:$24 sps:$4 sm:$0xff]  }
  0x60   :  { %1127 = vmatprep.subr.bf16.mxu0 %v1547_v39  ;;  %v1602_v39 = vld [vmem:[%s2103_s7 + $0xa0] ss:$24 sps:$4 sm:$0xff]  }
  0xe2   :  { %v1411_v13 = vpop.f32.mrf.mxu0 }
  0xe4   :  { %v1433_v14 = vpop.f32.mrf.mxu1  ;;  %v1412_v15 = vpop.f32.mrf.mxu0 }
  0xe5   :  { %v1413_v21 = vadd.f32 %v1412_v15, %v1411_v13  ;;  %v1575_v13 = vld [vmem:[%s2103_s7 + $0x68] ss:$24 sps:$4 sm:$0xff]   ;;  %v1581_v15 = vld [vmem:[%s2103_s7 + $0x38] ss:$24 sps:$4 sm:$0xff]  }
  0xe6   :  { %v1434_v16 = vpop.f32.mrf.mxu1  ;;  %v1414_v17 = vpop.f32.mrf.mxu0 }
  0xe7   :  { %v492_v23 = vadd.f32 %v1413_v21, %v1284_v22  ;;  %v1435_v24 = vadd.f32 %v1434_v16, %v1433_v14  ;;  %v1583_v14 = vld [vmem:[%s2103_s7 + $0x3c] ss:$24 sps:$4 sm:$0xff]   ;;  %v1342_v22 = vld [vmem:[%s2102_s6] ss:$0 sm:$0xff]  ;;  %s1622_s6 = scalar_lea.vmem %s1272_s24, 32 }
  0xe8   :  { %v1436_v18 = vpop.f32.mrf.mxu1  ;;  %v1415_v19 = vpop.f32.mrf.mxu0  ;;  %v1586_v17 = vld [vmem:[%s2103_s7 + $0x4] ss:$24 sps:$4 sm:$0xff]   ;;  %p1623_p0 = scmp.ne.s32.totalorder %s1272_s24, %s1622_s6  ;;  %p1628_p2 = scmp.lt.s32.totalorder %s1622_s6, %s1622_s6 }
  0xe9   :  { %v532_v25 = vadd.f32 %v1435_v24, %v492_v23  ;;  %v1584_v18 = vld [vmem:[%s2103_s7] ss:$24 sps:$4 sm:$0xff]   ;;  %v1589_v19 = vld [vmem:[%s2103_s7 + $0xc] ss:$24 sps:$4 sm:$0xff]  }
  0xea   :  { %v1437_v20 = vpop.f32.mrf.mxu1  ;;  %v1592_v21 = vld [vmem:[%s2103_s7 + $0x164] ss:$24 sps:$4 sm:$0xff]   ;;  %p1629_p3 = por %p1628_p2, %p1627_p1 }
  0xeb   :  { %v1587_v20 = vld [vmem:[%s2103_s7 + $0x8] ss:$24 sps:$4 sm:$0xff]  }
  0xec   :  { %p1630_p4 = pnand %p1629_p3, %p1623_p0 }
 0x11a   :  { %v571_v26 = vpop.f32.mrf.mxu0 }
 0x11b   :  { %v572_v27 = vadd.f32 %v571_v26, %v532_v25 }
 0x11c   :  { %v573_v28 = vpop.f32.mrf.mxu0 }
 0x11d   :  { %v577_v29 = vmax.f32 %v572_v27, 0.0  ;;  %v1590_v28 = vld [vmem:[%s2103_s7 + $0x160] ss:$24 sps:$4 sm:$0xff]  }
 0x11e   :  { %v574_v30 = vpop.f32.mrf.mxu0 }
 0x11f   :  { %v578_v31 = vpack.c.bf16 %v577_v29, %v577_v29  ;;  %v1595_v30 = vld [vmem:[%s2103_s7 + $0x134] ss:$24 sps:$4 sm:$0xff]  }
 0x120   :  { %v575_v33 = vpop.f32.mrf.mxu0 }
 0x121   :  { %1468 = vmatmul.mubr.bf16.vlgmr.msra.gmra.mxu1 %v578_v31  ;;  %v1593_v33 = vld [vmem:[%s2103_s7 + $0x130] ss:$24 sps:$4 sm:$0xff]  }
 0x122   :  { %1118 = vmatprep.mubr.bf16.mxu1 %v1667_v37  ;;  %1087 = vmatpush1.bf16.msra.mxu1 %v1542_v36  ;;  %v1601_v36 = vld [vmem:[%s2103_s7 + $0xd4] ss:$24 sps:$4 sm:$0xff]  }
 0x123   :  { %1088 = vmatprep.subr.bf16.mxu1 %v1550_v41  ;;  %v1607_v41 = vld [vmem:[%s2103_s7 + $0x74] ss:$24 sps:$4 sm:$0xff]  }
 0x126   :  { %1089 = vmatpush1.bf16.msra.mxu1 %v1548_v42  ;;  %v1605_v42 = vld [vmem:[%s2103_s7 + $0x70] ss:$24 sps:$4 sm:$0xff]  }
 0x127   :  { %1090 = vmatprep.subr.bf16.mxu1 %v1556_v43  ;;  %v1610_v43 = vld [vmem:[%s2103_s7 + $0x44] ss:$24 sps:$4 sm:$0xff]  }
 0x12a   :  { %1091 = vmatpush1.bf16.msra.mxu1 %v1554_v44  ;;  %v1608_v44 = vld [vmem:[%s2103_s7 + $0x40] ss:$24 sps:$4 sm:$0xff]  }
 0x12b   :  { %1092 = vmatprep.subr.bf16.mxu1 %v1562_v45  ;;  %v1613_v45 = vld [vmem:[%s2103_s7 + $0x14] ss:$24 sps:$4 sm:$0xff]  }
 0x12e   :  { %1093 = vmatpush1.bf16.msra.mxu1 %v1560_v46  ;;  %v1611_v46 = vld [vmem:[%s2103_s7 + $0x10] ss:$24 sps:$4 sm:$0xff]  }
 0x12f   :  { %1094 = vmatprep.subr.bf16.mxu1 %v1568_v47 }
 0x132   :  { %1095 = vmatpush1.bf16.msra.mxu1 %v1566_v48 }
 0x133   :  { %1096 = vmatprep.subr.bf16.mxu1 %v1574_v49 }
 0x136   :  { %1097 = vmatpush1.bf16.msra.mxu1 %v1572_v50 }
 0x137   :  { %1098 = vmatprep.subr.bf16.mxu1 %v1580_v51 }
 0x13a   :  { %1099 = vmatpush1.bf16.msra.mxu1 %v1578_v52 }
 0x13b   :  { %1100 = vmatprep.subr.bf16.mxu1 %v1586_v17 }
 0x13e   :  { %1101 = vmatpush1.bf16.msra.mxu1 %v1584_v18 }
 0x13f   :  { %1168 = vmatprep.subr.bf16.mxu1 %v1592_v21 }
 0x1e1   :  { %v684_v54 = vpop.f32.mrf.mxu1 }
 0x1e2   :  { %v685_v55 = vadd.f32 %v1332_v53, %v684_v54 }
 0x1e3   :  { %v1469_v56 = vpop.f32.mrf.mxu1 }
 0x1e4   :  { %v1341_v57 = vmul.f32 -1.442695, %v685_v55 }
 0x1e5   :  { %v687_v58 = vpop.f32.mrf.mxu1 }
 0x1e6   :  { %1614 = vpow2.f32 %v1341_v57 }
 0x1e7   :  { %v1470_v59 = vpop.f32.mrf.mxu1 }
 0x1f3   :  { %v1615_v60 = vpop.eup %1614 }
 0x1f4   :  { %v693_v61 = vadd.f32 1.0, %v1615_v60 }
 0x1f6   :  { %1616 = vrcp.f32 %v693_v61 }
 0x203   :  { %v1617_v62 = vpop.eup %1616 }
 0x204   :  { %v1394_v0 = vmul.f32 -1.442695, %v1617_v62  ;;  %v696_v1 = vpack.c.bf16 %v1617_v62, %v1617_v62 }
 0x206   :  { %1476 = vmatmul.mubr.msk.bf16.vlgmr.msra.gmra.mxu0 %vm720_vm3, %v696_v1  ;;  %1618 = vpow2.f32 %v1394_v0 }
 0x207   :  { %1128 = vmatpush1.bf16.msra.mxu0 %v1545_v63  ;;  %1159 = vmatprep.mubr.bf16.mxu0 %v1667_v37 }
 0x208   :  { %1129 = vmatprep.subr.bf16.mxu0 %v1553_v2 }
 0x20b   :  { %1130 = vmatpush1.bf16.msra.mxu0 %v1551_v3 }
 0x20c   :  { %1131 = vmatprep.subr.bf16.mxu0 %v1559_v4 }
 0x20f   :  { %1132 = vmatpush1.bf16.msra.mxu0 %v1557_v5 }
 0x210   :  { %1133 = vmatprep.subr.bf16.mxu0 %v1565_v6 }
 0x213   :  { %v1619_v9 = vpop.eup %1618  ;;  %1134 = vmatpush1.bf16.msra.mxu0 %v1563_v7 }
 0x214   :  { %1135 = vmatprep.subr.bf16.mxu0 %v1571_v8  ;;  %v1250_v12 = vadd.f32 1.0, %v1619_v9 }
 0x216   :  { %1620 = vrcp.f32 %v1250_v12 }
 0x217   :  { %1136 = vmatpush1.bf16.msra.mxu0 %v1569_v10 }
 0x218   :  { %1137 = vmatprep.subr.bf16.mxu0 %v1577_v11 }
 0x21b   :  { %1138 = vmatpush1.bf16.msra.mxu0 %v1575_v13 }
 0x21c   :  { %1139 = vmatprep.subr.bf16.mxu0 %v1583_v14 }
 0x21f   :  { %1140 = vmatpush1.bf16.msra.mxu0 %v1581_v15 }
 0x220   :  { %1141 = vmatprep.subr.bf16.mxu0 %v1589_v19 }
 0x223   :  { %v1621_v16 = vpop.eup %1620  ;;  %1142 = vmatpush1.bf16.msra.mxu0 %v1587_v20 }
 0x224   :  { %1254 = vst.msk [vmem:[#allocation4] sm:$0x3] %vm1253_vm4, %v1621_v16 }
 0x2c6   :  { %v758_v23 = vpop.f32.mrf.mxu0 }
 0x2c7   :  { %v759_v24 = vadd.f32 %v1342_v22, %v758_v23 }
 0x2c8   :  { %v1477_v25 = vpop.f32.mrf.mxu0 }
 0x2c9   :  { %v764_v26 = vmax.f32 %v759_v24, 0.0 }
 0x2ca   :  { %v761_v27 = vpop.f32.mrf.mxu0 }
 0x2cb   :  { %v765_v29 = vpack.c.bf16 %v764_v26, %v764_v26 }
 0x2cc   :  { %v1478_v31 = vpop.f32.mrf.mxu0 }
 0x2cd   :  { %1119 = vmatmul.mubr.bf16.vlgmr.msra.gmra.mxu1 %v765_v29  ;;  %1160 = vmatmul.mubr.bf16.vlgmr.msra.gmra.mxu0 %v765_v29 }
 0x2ce   :  { %1169 = vmatpush1.bf16.msra.mxu1 %v1590_v28  ;;  %1200 = vmatprep.mubr.bf16.mxu1 %v1667_v37  ;;  %v1599_v37 = vld [vmem:[%s2103_s7 + $0xd0] ss:$24 sps:$4 sm:$0xff]  }
 0x2cf   :  { %1170 = vmatprep.subr.bf16.mxu1 %v1595_v30 }
 0x2d2   :  { %1171 = vmatpush1.bf16.msra.mxu1 %v1593_v33 }
 0x2d3   :  { %1172 = vmatprep.subr.bf16.mxu1 %v1598_v34 }
 0x2d6   :  { %1173 = vmatpush1.bf16.msra.mxu1 %v1596_v35 }
 0x2d7   :  { %1174 = vmatprep.subr.bf16.mxu1 %v1601_v36 }
 0x2da   :  { %1175 = vmatpush1.bf16.msra.mxu1 %v1599_v37 }
 0x2db   :  { %1176 = vmatprep.subr.bf16.mxu1 %v1604_v38 }
 0x2de   :  { %1177 = vmatpush1.bf16.msra.mxu1 %v1602_v39 }
 0x2df   :  { %1178 = vmatprep.subr.bf16.mxu1 %v1607_v41 }
 0x2e2   :  { %1179 = vmatpush1.bf16.msra.mxu1 %v1605_v42 }
 0x2e3   :  { %1180 = vmatprep.subr.bf16.mxu1 %v1610_v43 }
 0x2e6   :  { %1181 = vmatpush1.bf16.msra.mxu1 %v1608_v44 }
 0x2e7   :  { %1182 = vmatprep.subr.bf16.mxu1 %v1613_v45 }
 0x2ea   :  { %1183 = vmatpush1.bf16.msra.mxu1 %v1611_v46 }
 0x2ed   :  { %1201 = vmatmul.mubr.bf16.vlgmr.msra.gmra.mxu1 %v765_v29 }
 0x2ee   :  { %1633 = shalt.err (!%p1630_p4)
}
 0x2ef   :  { %1274 = dma.vmem_to_hbm [thread:$0]  %s1272_s24, 32, %s2106_s10, [#allocation5]   ;;  %v818_v47 = vsub.s32 0, %v1820_v32  ;;  %v826_v48 = vsub.s32 2, %v1820_v32  ;;  %v822_v49 = vsub.s32 1, %v1820_v32  ;;  %v830_v50 = vsub.s32 3, %v1820_v32 }
 0x2f0   :  { %v814_v51 = vld [vmem:[%s2104_s8] sm:$0x3f]  ;;  %v834_v9 = vsub.s32 4, %v1820_v32  ;;  %v838_v10 = vsub.s32 5, %v1820_v32  ;;  %vm1243_vm5 = vcmask 1041408   ;;  %vm1244_vm6 = vcmask 699394  }
 0x2f1   :  { %v819_v52 = vrot.slane %v814_v51, %v818_v47  ;;  %v827_v53 = vrot.slane %v814_v51, %v826_v48  ;;  %v823_v54 = vrot.slane %v814_v51, %v822_v49  ;;  %v831_v55 = vrot.slane %v814_v51, %v830_v50  ;;  %s1671_s8 = smov [#allocation2]   ;;  %vm1245_vm7 = vmor %vm1244_vm6, %vm1243_vm5 }
 0x2f2   :  { %v835_v11 = vrot.slane %v814_v51, %v834_v9  ;;  %v839_v12 = vrot.slane %v814_v51, %v838_v10  ;;  %s1261_s10 = sshll.u32 %s1671_s8, 4  ;;  %s1262_s10 = int_to_ptr.vmem [resolvable:$true] %s1261_s10 }
 0x2f3   :  { %s1642_s27 = scalar_lea.vmem %s1262_s10, 192  ;;  %p1647_p6 = scmp.lt.s32.totalorder %s1262_s10, %s1262_s10 }
 0x2f4   :  { %p1643_p5 = scmp.ne.s32.totalorder %s1262_s10, %s1642_s27  ;;  %p1648_p7 = scmp.lt.s32.totalorder %s1642_s27, %s1642_s27 }
 0x2f6   :  { %p1649_p8 = por %p1648_p7, %p1647_p6 }
 0x2f8   :  { %p1650_p9 = pnand %p1649_p8, %p1643_p5 }
 0x38d   :  { %v1120_v56 = vpop.f32.mrf.mxu1  ;;  %v1161_v57 = vpop.f32.mrf.mxu0 }
 0x38e   :  { %v1121_v60 = vadd.f32 %v1120_v56, %v819_v52  ;;  %v1162_v61 = vadd.f32 %v1161_v57, %v827_v53 }
 0x38f   :  { %v1122_v58 = vpop.f32.mrf.mxu1  ;;  %v1163_v59 = vpop.f32.mrf.mxu0 }
 0x390   :  { %v1123_v62 = vadd.f32 %v1122_v58, %v823_v54  ;;  %v1164_v63 = vadd.f32 %v1163_v59, %v831_v55 }
 0x391   :  { %v1124_v0 = vpop.f32.mrf.mxu1  ;;  %v1165_v1 = vpop.f32.mrf.mxu0 }
 0x392   :  { %v1215_v2 = vcombine.low %v1121_v60, %v1123_v62  ;;  %v1216_v3 = vcombine.low %v1162_v61, %v1164_v63 }
 0x393   :  { %v1125_v4 = vpop.f32.mrf.mxu1  ;;  %v1166_v5 = vpop.f32.mrf.mxu0 }
 0x394   :  { %v1223_v6 = vrot.slane %v1215_v2, %v1830_v40  ;;  %v1230_v7 = vrot.slane %v1216_v3, %v1830_v40 }
 0x396   :  { %v1231_v8 = vcombine.low %v1223_v6, %v1230_v7 }
 0x398   :  { %1242 = vst [vmem:[#allocation2] sm:$0xff] %v1231_v8 }
 0x3ad   :  { %v1202_v13 = vpop.f32.mrf.mxu1 }
 0x3ae   :  { %v1203_v15 = vadd.f32 %v1202_v13, %v835_v11 }
 0x3af   :  { %v1204_v14 = vpop.f32.mrf.mxu1 }
 0x3b0   :  { %v1205_v16 = vadd.f32 %v1204_v14, %v839_v12 }
 0x3b1   :  { %v1206_v17 = vpop.f32.mrf.mxu1 }
 0x3b2   :  { %v1232_v18 = vcombine.low %v1203_v15, %v1205_v16 }
 0x3b3   :  { %v1207_v19 = vpop.f32.mrf.mxu1 }
 0x3b4   :  { %v1239_v20 = vrot.slane %v1232_v18, %v1830_v40 }
 0x3b6   :  { %1246 = vst.msk [vmem:[#allocation2 + $0x8] sm:$0xf] %vm1245_vm7, %v1239_v20 }
 0x3b7   :  { %1653 = shalt.err (!%p1650_p9)
}
 0x3b8   :  { %1264 = dma.vmem_to_hbm [thread:$0]  %s1262_s10, 192, %s2105_s9, [#allocation3]  }
 0x3b9   :  { %1662 = dma.done.wait [#allocation3], 192  }
 0x3ba   :  { %1663 = vsyncadd [#allocation3], 4294967104 }
 0x3bb   :  { %1664 = dma.done.wait [#allocation5], 32  }
 0x3bc   :  { %1665 = vsyncadd [#allocation5], 4294967264 }
 0x3bd   :  { %1281 = vsyncpa [#allocation3], 1 }
 0x3be   :  { %1282 = vsyncpa [#allocation5], 1 }

</bundles_post_ra>
